<compile_context>
chip_gen: v5e
topology: v5e:2x2
jax: 0.10.0
libtpu: 0.0.40
codegen_flags: <defaults>
</compile_context>

<pallas_src>
import functools

import jax
import jax.numpy as jnp
import numpy as np
from jax.experimental import pallas as pl
from jax.experimental.pallas import tpu as pltpu


_VMEM_INPUT_BUDGET = 24 * 1024 * 1024   # double-buffered input tiles target
_VMEM_LIMIT_FLOOR = 32 * 1024 * 1024    # raise v5e's 16 MiB default scoped VMEM
_VMEM_LIMIT_CAP = 48 * 1024 * 1024      # stay well inside v7x's 64 MiB VMEM/TC


def _round_up(v, m):
    return ((v + m - 1) // m) * m


def _gamma_weight(one_minus_pt, gamma):
    """(1 - pt) ** gamma.  Integer gamma -> VPU multiplies (EUP stays free for
    the softmax exps); also sidesteps 0**0 for gamma == 0."""
    g = float(gamma)
    if g.is_integer() and 0.0 <= g <= 16.0:
        ig = int(g)
        if ig == 0:
            return jnp.ones_like(one_minus_pt)
        w = one_minus_pt
        for _ in range(ig - 1):
            w = w * one_minus_pt
        return w
    return one_minus_pt ** g


# --------------------------------------------------------------------------
# Kernel A: NCHW / segmentation layout.  Logits slab (C, bhw): classes on
# sublanes, spatial lane-dense.  Partial sum accumulated into the resident
# output block across the inner ("arbitrary") grid axis.
# --------------------------------------------------------------------------
def _make_nchw_kernel(c, bhw, hw, nbi, nb_full, gamma, use_alpha, needs_mask):

    def compute_loss(x_ref, t_ref, a_ref):
        x = x_ref[0].astype(jnp.float32)          # (C, bhw)
        t = t_ref[0]                              # (1, bhw) int32

        # numerically stable log-softmax along the class (sublane) axis
        m = jnp.max(x, axis=0, keepdims=True)
        z = x - m
        lse = jnp.log(jnp.sum(jnp.exp(z), axis=0, keepdims=True))

        # one shared comparison feeds both gathers (no f32 one-hot temporary)
        cls = jax.lax.broadcasted_iota(jnp.int32, (c, bhw), 0)
        sel = cls == t                                               # (C, bhw)
        zt = jnp.sum(jnp.where(sel, z, 0.0), axis=0, keepdims=True)  # (1, bhw)

        logpt = zt - lse
        pt = jnp.exp(logpt)

        if use_alpha:
            a = a_ref[...].astype(jnp.float32)                       # (C, 1)
            at = jnp.sum(jnp.where(sel, a, 0.0), axis=0, keepdims=True)
            logpt = logpt * at

        w = _gamma_weight(1.0 - pt, gamma)
        return -w * logpt                                            # (1, bhw)

    def body(x_ref, t_ref, a_ref, out_ref):
        ji = pl.program_id(2)

        @pl.when(ji == 0)
        def _init():
            out_ref[...] = jnp.zeros_like(out_ref)

        loss = compute_loss(x_ref, t_ref, a_ref)

        if needs_mask:
            jg = pl.program_id(1) * nbi + ji      # global spatial block index

            @pl.when(jg < nb_full)                # full interior block
            def _full():
                out_ref[...] += jnp.sum(loss, axis=1,
                                        keepdims=True).reshape(1, 1, 1, 1)

            @pl.when(jg >= nb_full)               # ragged tail / overshoot block
            def _tail():
                lane = jax.lax.broadcasted_iota(jnp.int32, (1, bhw), 1)
                valid = (jg * bhw + lane) < hw
                # jnp.where (not *): garbage lanes can never inject NaN*0
                masked = jnp.where(valid, loss, 0.0)
                out_ref[...] += jnp.sum(masked, axis=1,
                                        keepdims=True).reshape(1, 1, 1, 1)
        else:
            out_ref[...] += jnp.sum(loss, axis=1,
                                    keepdims=True).reshape(1, 1, 1, 1)

    if use_alpha:
        return body
    return lambda x_ref, t_ref, out_ref: body(x_ref, t_ref, None, out_ref)


# --------------------------------------------------------------------------
# Kernel B: 2-D (M, C) classification layout.  Row tiles (bm, C): rows on
# sublanes, classes lane-dense — no HBM transpose in the wrapper.
# --------------------------------------------------------------------------
def _make_rows_kernel(c, bm, m_rows, nbm, gamma, use_alpha, needs_mask):

    def body(x_ref, t_ref, a_ref, out_ref):
        x = x_ref[...].astype(jnp.float32)        # (bm, C)
        t = t_ref[...]                            # (bm, 1) int32

        mx = jnp.max(x, axis=1, keepdims=True)
        z = x - mx
        lse = jnp.log(jnp.sum(jnp.exp(z), axis=1, keepdims=True))

        cls = jax.lax.broadcasted_iota(jnp.int32, (bm, c), 1)
        sel = cls == t                                               # (bm, C)
        zt = jnp.sum(jnp.where(sel, z, 0.0), axis=1, keepdims=True)  # (bm, 1)

        logpt = zt - lse
        pt = jnp.exp(logpt)

        if use_alpha:
            a = a_ref[...].astype(jnp.float32)                       # (1, C)
            at = jnp.sum(jnp.where(sel, a, 0.0), axis=1, keepdims=True)
            logpt = logpt * at

        w = _gamma_weight(1.0 - pt, gamma)
        loss = -w * logpt                                            # (bm, 1)

        def write(v):
            out_ref[...] = jnp.sum(v, axis=0, keepdims=True).reshape(1, 1, 1)

        if needs_mask:
            i = pl.program_id(0)

            @pl.when(i < nbm - 1)
            def _full():
                write(loss)

            @pl.when(i == nbm - 1)                # only the last block is ragged
            def _tail():
                row = jax.lax.broadcasted_iota(jnp.int32, (bm, 1), 0)
                valid = (i * bm + row) < m_rows
                write(jnp.where(valid, loss, 0.0))
        else:
            write(loss)

    if use_alpha:
        return body
    return lambda x_ref, t_ref, out_ref: body(x_ref, t_ref, None, out_ref)


def _prep_alpha(alpha, c):
    """Mirrors FocalLoss.__init__ alpha handling.  Must be static (float or
    tuple) so it can be a jit static arg."""
    if alpha is None:
        return None
    if isinstance(alpha, (float, int)):
        a = np.array([float(alpha), 1.0 - float(alpha)], np.float32)
    else:
        a = np.asarray(alpha, dtype=np.float32).reshape(-1)
    assert a.shape[0] == c, "alpha length must equal number of classes"
    return a


@functools.partial(jax.jit,
                   static_argnames=("gamma", "alpha", "size_average",
                                    "block_lanes"))
def focal_loss(x, target, *, gamma=0.0, alpha=None, size_average=True,
               block_lanes=None):
    """Matches FocalLoss.forward for (N, C, *spatial) logits or 2-D (M, C).

    `alpha` must be None, a float, or a tuple of per-class weights (static).
    `block_lanes` optionally caps the spatial lane-block (testing / tuning).
    Logits may be f32 or bf16 (no HBM upcast); targets are cast to int32.
    """
    if x.ndim > 2:
        # ---------------- NCHW / segmentation path ----------------
        n, c = x.shape[0], x.shape[1]
        x3 = x.reshape(n, c, -1)                          # free reshape (N,C,HW)
        t3 = target.reshape(n, 1, -1).astype(jnp.int32)   # (N,1,HW) lane-dense
        hw = x3.shape[2]
        total_elems = n * hw

        a_np = _prep_alpha(alpha, c)
        use_alpha = a_np is not None

        # sublane-padding-aware VMEM accounting (f32: pad C to 8; bf16: to 16)
        itemsize = min(4, jnp.dtype(x3.dtype).itemsize)
        sub_tile = 8 * (4 // itemsize)
        padded_c = _round_up(c, sub_tile)
        # double-buffered logits tile + double-buffered (8-sublane-padded)
        # int32 targets tile, per lane column:
        bytes_per_lane = 2 * (padded_c * itemsize + 8 * 4)
        max_lanes = max(128, _VMEM_INPUT_BUDGET // bytes_per_lane)
        if block_lanes is not None:
            max_lanes = min(max_lanes, max(128, int(block_lanes)))
        bhw = hw if hw <= max_lanes else (max_lanes // 128) * 128

        nb = pl.cdiv(hw, bhw)          # spatial blocks
        nb_full = hw // bhw            # fully in-bounds blocks

        # Keep an outer "parallel" axis (megacore on v7x) while accumulating
        # across the inner "arbitrary" axis (one HBM writeback per chunk).
        target_parallel = 4
        nbo = max(1, min(nb, pl.cdiv(target_parallel, max(n, 1))))
        nbi = pl.cdiv(nb, nbo)
        nbo = pl.cdiv(nb, nbi)                         # tighten: overshoot < nbo
        needs_mask = (hw % bhw != 0) or (nbo * nbi != nb)

        if nbo * nbi == nb:
            def sp_idx(i, jo, ji):
                return (i, 0, jo * nbi + ji)
        else:
            # overshoot blocks re-read the last valid block (clamped index);
            # their contribution is masked to zero inside the kernel.
            def sp_idx(i, jo, ji):
                return (i, 0, jnp.minimum(jo * nbi + ji, nb - 1))

        kernel = _make_nchw_kernel(c, bhw, hw, nbi, nb_full, float(gamma),
                                   use_alpha, needs_mask)

        in_specs = [pl.BlockSpec((1, c, bhw), sp_idx),        # logits slab
                    pl.BlockSpec((1, 1, bhw), sp_idx)]        # targets
        args = [x3, t3]
        if use_alpha:
            in_specs.append(pl.BlockSpec((c, 1), lambda i, jo, ji: (0, 0)))
            args.append(jnp.asarray(a_np.reshape(c, 1)))

        tile_bytes = 2 * (padded_c * bhw * itemsize + 8 * bhw * 4)
        vmem_limit = min(_VMEM_LIMIT_CAP,
                         max(_VMEM_LIMIT_FLOOR, int(tile_bytes * 1.5)))

        partials = pl.pallas_call(
            kernel,
            out_shape=jax.ShapeDtypeStruct((n, nbo, 1, 1), jnp.float32),
            grid=(n, nbo, nbi),
            in_specs=in_specs,
            out_specs=pl.BlockSpec((1, 1, 1, 1), lambda i, jo, ji: (i, jo, 0, 0)),
            compiler_params=pltpu.CompilerParams(
                dimension_semantics=("parallel", "parallel", "arbitrary"),
                vmem_limit_bytes=vmem_limit),
        )(*args)
    else:
        # ---------------- 2-D (M, C) classification path ----------------
        m_rows, c = x.shape
        total_elems = m_rows
        x2 = x                                            # NO wrapper transpose
        t2 = target.reshape(m_rows, 1).astype(jnp.int32)

        a_np = _prep_alpha(alpha, c)
        use_alpha = a_np is not None

        itemsize = min(4, jnp.dtype(x2.dtype).itemsize)
        lane_c = _round_up(c, 128)
        # per-row VMEM: lane-padded logits row + lane-padded int32 target row,
        # both double-buffered
        bytes_per_row = 2 * (lane_c * itemsize + 128 * 4)
        max_rows = max(8, _VMEM_INPUT_BUDGET // bytes_per_row)
        bm = m_rows if m_rows <= max_rows else (max_rows // 8) * 8
        nbm = pl.cdiv(m_rows, bm)
        needs_mask = (m_rows % bm) != 0

        kernel = _make_rows_kernel(c, bm, m_rows, nbm, float(gamma),
                                   use_alpha, needs_mask)

        in_specs = [pl.BlockSpec((bm, c), lambda i: (i, 0)),
                    pl.BlockSpec((bm, 1), lambda i: (i, 0))]
        args = [x2, t2]
        if use_alpha:
            in_specs.append(pl.BlockSpec((1, c), lambda i: (0, 0)))
            args.append(jnp.asarray(a_np.reshape(1, c)))

        tile_bytes = 2 * (bm * lane_c * itemsize + bm * 128 * 4)
        vmem_limit = min(_VMEM_LIMIT_CAP,
                         max(_VMEM_LIMIT_FLOOR, int(tile_bytes * 1.5)))

        partials = pl.pallas_call(
            kernel,
            out_shape=jax.ShapeDtypeStruct((nbm, 1, 1), jnp.float32),
            grid=(nbm,),
            in_specs=in_specs,
            out_specs=pl.BlockSpec((1, 1, 1), lambda i: (i, 0, 0)),
            compiler_params=pltpu.CompilerParams(
                dimension_semantics=("parallel",),
                vmem_limit_bytes=vmem_limit),
        )(*args)

    total = jnp.sum(partials)
    if size_average:
        return total / jnp.float32(total_elems)
    return total


def _focal_loss_ref(x, target, gamma, alpha, size_average):
    """Pure-JAX reference mirroring the PyTorch forward, for verification."""
    if x.ndim > 2:
        n, c = x.shape[0], x.shape[1]
        x2 = jnp.transpose(x.reshape(n, c, -1), (0, 2, 1)).reshape(-1, c)
    else:
        x2 = x
    t = target.reshape(-1)
    logp = jax.nn.log_softmax(x2.astype(jnp.float32), axis=1)
    logpt = jnp.take_along_axis(logp, t[:, None], axis=1)[:, 0]
    pt = jnp.exp(logpt)
    if alpha is not None:
        if isinstance(alpha, (float, int)):
            a = jnp.array([float(alpha), 1.0 - float(alpha)], jnp.float32)
        else:
            a = jnp.asarray(alpha, jnp.float32)
        logpt = logpt * a[t]
    loss = -1.0 * (1.0 - pt) ** gamma * logpt
    return loss.mean() if size_average else loss.sum()


if __name__ == "__main__":
    key = jax.random.PRNGKey(0)
    kx, kt, kx2, kt2, kx3, kt3, kx4, kt4 = jax.random.split(key, 8)

    # 1) NCHW segmentation-style input, per-class alpha, gamma=2 (mean)
    N, C, H, W = 2, 4, 16, 16
    x = jax.random.normal(kx, (N, C, H, W), dtype=jnp.float32)
    target = jax.random.randint(kt, (N, H, W), 0, C, dtype=jnp.int32)
    alpha = (0.1, 0.2, 0.3, 0.4)
    out = jax.block_until_ready(
        focal_loss(x, target, gamma=2.0, alpha=alpha, size_average=True))
    ref = _focal_loss_ref(x, target, 2.0, alpha, True)
    assert np.allclose(np.asarray(out), np.asarray(ref),
                       rtol=1e-5, atol=1e-6), (out, ref)

    # 2) alpha=None / sum path, gamma=0 (2-input kernel variant)
    out2 = jax.block_until_ready(
        focal_loss(x, target, gamma=0.0, alpha=None, size_average=False))
    ref2 = _focal_loss_ref(x, target, 0.0, None, False)
    assert np.allclose(np.asarray(out2), np.asarray(ref2),
                       rtol=1e-5, atol=1e-4), (out2, ref2)

    # 3) bf16 logits accepted without an HBM upcast pass
    xb = x.astype(jnp.bfloat16)
    out3 = jax.block_until_ready(
        focal_loss(xb, target, gamma=2.0, alpha=None, size_average=True))
    ref3 = _focal_loss_ref(xb.astype(jnp.float32), target, 2.0, None, True)
    assert np.allclose(np.asarray(out3), np.asarray(ref3),
                       rtol=1e-5, atol=1e-5), (out3, ref3)

    # 4) multi-block spatial grid with inner accumulation + overshoot-block
    #    masking (nb=5 -> nbo=3, nbi=2, one clamped duplicate block)
    x4 = jax.random.normal(kx3, (1, C, 16, 40), dtype=jnp.float32)
    t4 = jax.random.randint(kt3, (1, 16, 40), 0, C, dtype=jnp.int32)
    out4 = jax.block_until_ready(
        focal_loss(x4, t4, gamma=2.0, alpha=alpha, size_average=True,
                   block_lanes=128))
    ref4 = _focal_loss_ref(x4, t4, 2.0, alpha, True)
    assert np.allclose(np.asarray(out4), np.asarray(ref4),
                       rtol=1e-5, atol=1e-6), (out4, ref4)

    # 5) ragged spatial tail (hw=221 not divisible by 128)
    x5 = jax.random.normal(kx4, (2, C, 13, 17), dtype=jnp.float32)
    t5 = jax.random.randint(kt4, (2, 13, 17), 0, C, dtype=jnp.int32)
    out5 = jax.block_until_ready(
        focal_loss(x5, t5, gamma=1.0, alpha=None, size_average=False,
                   block_lanes=128))
    ref5 = _focal_loss_ref(x5, t5, 1.0, None, False)
    assert np.allclose(np.asarray(out5), np.asarray(ref5),
                       rtol=1e-5, atol=1e-4), (out5, ref5)

    # 6) 2-D (M, C) classification path (no transpose), non-integer gamma
    M2 = 32
    x2d = jax.random.normal(kx2, (M2, C), dtype=jnp.float32)
    t2d = jax.random.randint(kt2, (M2,), 0, C, dtype=jnp.int32)
    out6 = jax.block_until_ready(
        focal_loss(x2d, t2d, gamma=1.5, alpha=None, size_average=True))
    ref6 = _focal_loss_ref(x2d, t2d, 1.5, None, True)
    assert np.allclose(np.asarray(out6), np.asarray(ref6),
                       rtol=1e-5, atol=1e-6), (out6, ref6)

    print("KERNEL_OK")
</pallas_src>

<mosaic_0001>
module attributes {stable_mosaic.version = 11 : i64} {
  func.func @body(%arg0: i32, %arg1: i32, %arg2: i32, %arg3: memref<1x4x256xf32, #tpu.memory_space<vmem>>, %arg4: memref<1x1x256xi32, #tpu.memory_space<vmem>>, %arg5: memref<4x1xf32, #tpu.memory_space<vmem>>, %arg6: memref<1x1x1x1xf32, #tpu.memory_space<vmem>>) attributes {dimension_semantics = [#tpu.dimension_semantics<parallel>, #tpu.dimension_semantics<parallel>, #tpu.dimension_semantics<arbitrary>], iteration_bounds = array<i64: 2, 1, 1>, scalar_prefetch = 0 : i64, scratch_operands = 0 : i64, tpu.core_type = #tpu.core_type<tc>, window_params = [{transform_indices = @transform_0, window_bounds = array<i64: 1, 4, 256>}, {transform_indices = @transform_1, window_bounds = array<i64: 1, 1, 256>}, {pipeline_mode = #tpu.pipeline_mode<synchronous>, transform_indices = @transform_2, window_bounds = array<i64: 4, 1>}, {transform_indices = @transform_3, window_bounds = array<i64: 1, 1, 1, 1>}]} {
    %c0_i32 = arith.constant 0 : i32
    %0 = arith.cmpi eq, %arg2, %c0_i32 : i32
    %1 = arith.extui %0 : i1 to i32
    %c0_i32_0 = arith.constant 0 : i32
    %2 = arith.cmpi ne, %1, %c0_i32_0 : i32
    scf.if %2 {
      %cst_24 = arith.constant 0.000000e+00 : f32
      %44 = vector.broadcast %cst_24 : f32 to vector<1x1x1x1xf32>
      %c0_25 = arith.constant 0 : index
      %c0_26 = arith.constant 0 : index
      %c0_27 = arith.constant 0 : index
      %c0_28 = arith.constant 0 : index
      %45 = vector.load %arg6[%c0_25, %c0_26, %c0_27, %c0_28] : memref<1x1x1x1xf32, #tpu.memory_space<vmem>>, vector<1x1x1x1xf32>
      tpu.vector_store %arg6[%c0_25, %c0_26, %c0_27, %c0_28], %44 {strides = array<i32>} : memref<1x1x1x1xf32, #tpu.memory_space<vmem>>, vector<1x1x1x1xf32>,
    } else {
    }
    %c0 = arith.constant 0 : index
    %c0_1 = arith.constant 0 : index
    %c0_2 = arith.constant 0 : index
    %3 = vector.load %arg3[%c0, %c0_1, %c0_2] : memref<1x4x256xf32, #tpu.memory_space<vmem>>, vector<1x4x256xf32>
    %4 = vector.shape_cast %3 : vector<1x4x256xf32> to vector<4x256xf32>
    %c0_3 = arith.constant 0 : index
    %c0_4 = arith.constant 0 : index
    %c0_5 = arith.constant 0 : index
    %5 = vector.load %arg4[%c0_3, %c0_4, %c0_5] : memref<1x1x256xi32, #tpu.memory_space<vmem>>, vector<1x1x256xi32>
    %6 = vector.shape_cast %5 : vector<1x1x256xi32> to vector<1x256xi32>
    %cst = arith.constant dense<0xFF800000> : vector<256xf32>
    %7 = vector.multi_reduction <maximumf>, %4, %cst [0] : vector<4x256xf32> to vector<256xf32>
    %8 = vector.shape_cast %7 : vector<256xf32> to vector<1x256xf32>
    %9 = vector.broadcast %8 : vector<1x256xf32> to vector<4x256xf32>
    %10 = arith.subf %4, %9 : vector<4x256xf32>
    %11 = math.exp %10 : vector<4x256xf32>
    %cst_6 = arith.constant dense<0.000000e+00> : vector<256xf32>
    %12 = vector.multi_reduction <add>, %11, %cst_6 [0] : vector<4x256xf32> to vector<256xf32>
    %13 = vector.shape_cast %12 : vector<256xf32> to vector<1x256xf32>
    %14 = math.log %13 : vector<1x256xf32>
    %15 = tpu.iota {dimensions = array<i32: 0>} : vector<4x256xi32>
    %16 = vector.broadcast %6 : vector<1x256xi32> to vector<4x256xi32>
    %17 = arith.cmpi eq, %15, %16 : vector<4x256xi32>
    %cst_7 = arith.constant 0.000000e+00 : f32
    %18 = vector.broadcast %cst_7 : f32 to vector<4x256xf32>
    %19 = arith.select %17, %10, %18 : vector<4x256xi1>, vector<4x256xf32>
    %cst_8 = arith.constant dense<0.000000e+00> : vector<256xf32>
    %20 = vector.multi_reduction <add>, %19, %cst_8 [0] : vector<4x256xf32> to vector<256xf32>
    %21 = vector.shape_cast %20 : vector<256xf32> to vector<1x256xf32>
    %22 = arith.subf %21, %14 : vector<1x256xf32>
    %23 = math.exp %22 : vector<1x256xf32>
    %c0_9 = arith.constant 0 : index
    %c0_10 = arith.constant 0 : index
    %24 = vector.load %arg5[%c0_9, %c0_10] : memref<4x1xf32, #tpu.memory_space<vmem>>, vector<4x1xf32>
    %cst_11 = arith.constant 0.000000e+00 : f32
    %25 = vector.shape_cast %24 : vector<4x1xf32> to vector<4x1xf32>
    %26 = vector.broadcast %25 : vector<4x1xf32> to vector<4x256xf32>
    %27 = vector.broadcast %cst_11 : f32 to vector<4x256xf32>
    %28 = arith.select %17, %26, %27 : vector<4x256xi1>, vector<4x256xf32>
    %cst_12 = arith.constant dense<0.000000e+00> : vector<256xf32>
    %29 = vector.multi_reduction <add>, %28, %cst_12 [0] : vector<4x256xf32> to vector<256xf32>
    %30 = vector.shape_cast %29 : vector<256xf32> to vector<1x256xf32>
    %31 = arith.mulf %22, %30 : vector<1x256xf32>
    %cst_13 = arith.constant 1.000000e+00 : f32
    %32 = vector.broadcast %cst_13 : f32 to vector<1x256xf32>
    %33 = arith.subf %32, %23 : vector<1x256xf32>
    %34 = arith.mulf %33, %33 : vector<1x256xf32>
    %cst_14 = arith.constant 0.000000e+00 : f32
    %35 = vector.broadcast %cst_14 : f32 to vector<1x256xf32>
    %36 = arith.subf %35, %34 : vector<1x256xf32>
    %37 = arith.mulf %36, %31 : vector<1x256xf32>
    %c0_15 = arith.constant 0 : index
    %c0_16 = arith.constant 0 : index
    %c0_17 = arith.constant 0 : index
    %c0_18 = arith.constant 0 : index
    %38 = vector.load %arg6[%c0_15, %c0_16, %c0_17, %c0_18] : memref<1x1x1x1xf32, #tpu.memory_space<vmem>>, vector<1x1x1x1xf32>
    %cst_19 = arith.constant dense<0.000000e+00> : vector<1xf32>
    %39 = vector.multi_reduction <add>, %37, %cst_19 [1] : vector<1x256xf32> to vector<1xf32>
    %40 = vector.shape_cast %39 : vector<1xf32> to vector<1x1xf32>
    %41 = vector.shape_cast %40 : vector<1x1xf32> to vector<1x1x1x1xf32>
    %42 = arith.addf %38, %41 : vector<1x1x1x1xf32>
    %c0_20 = arith.constant 0 : index
    %c0_21 = arith.constant 0 : index
    %c0_22 = arith.constant 0 : index
    %c0_23 = arith.constant 0 : index
    %43 = vector.load %arg6[%c0_20, %c0_21, %c0_22, %c0_23] : memref<1x1x1x1xf32, #tpu.memory_space<vmem>>, vector<1x1x1x1xf32>
    tpu.vector_store %arg6[%c0_20, %c0_21, %c0_22, %c0_23], %42 {strides = array<i32>} : memref<1x1x1x1xf32, #tpu.memory_space<vmem>>, vector<1x1x1x1xf32>,
    return
  }
  func.func @transform_0(%arg0: i32, %arg1: i32, %arg2: i32) -> (i32, i32, i32) {
    %c1_i32 = arith.constant 1 : i32
    %0 = arith.muli %arg1, %c1_i32 : i32
    %1 = arith.addi %0, %arg2 : i32
    %c0_i32 = arith.constant 0 : i32
    %c0_i32_0 = arith.constant 0 : i32
    return %arg0, %c0_i32, %1 : i32, i32, i32
  }
  func.func @transform_1(%arg0: i32, %arg1: i32, %arg2: i32) -> (i32, i32, i32) {
    %c1_i32 = arith.constant 1 : i32
    %0 = arith.muli %arg1, %c1_i32 : i32
    %1 = arith.addi %0, %arg2 : i32
    %c0_i32 = arith.constant 0 : i32
    %c0_i32_0 = arith.constant 0 : i32
    return %arg0, %c0_i32, %1 : i32, i32, i32
  }
  func.func @transform_2(%arg0: i32, %arg1: i32, %arg2: i32) -> (i32, i32) {
    %c0_i32 = arith.constant 0 : i32
    %c0_i32_0 = arith.constant 0 : i32
    %c0_i32_1 = arith.constant 0 : i32
    return %c0_i32, %c0_i32_0 : i32, i32
  }
  func.func @transform_3(%arg0: i32, %arg1: i32, %arg2: i32) -> (i32, i32, i32, i32) {
    %c0_i32 = arith.constant 0 : i32
    %c0_i32_0 = arith.constant 0 : i32
    %c0_i32_1 = arith.constant 0 : i32
    return %arg0, %arg1, %c0_i32, %c0_i32_0 : i32, i32, i32, i32
  }
}

</mosaic_0001>

<bundles_post_ra>
// kernel: focal_loss.1
= control target key start
LH: loop header
LB: loop body
LE: loop exit
PB: predicated region body
PF: predicated region fallthrough
CT: control target
= control target key end

     0   :  { %s574_s12 = smov 0   ;;  %s576_s13 = smov 0   ;;  %s650_s0 = inlined_call_operand.vmem [shape: f32[2,4,256], index: 0, kind: input, shape index: {}]   ;;  %s651_s1 = inlined_call_operand.vmem [shape: s32[2,1,256], index: 1, kind: input, shape index: {}]   ;;  %s652_s2 = inlined_call_operand.vmem [shape: f32[4,1], index: 2, kind: input, shape index: {}]   ;;  %s653_s3 = inlined_call_operand.vmem [shape: f32[2,1,1,1], index: 3, kind: output, shape index: {}]  }
   0x1   :  { %s578_s14 = smov 0  }
   0x2 LB: > { %s32_s15 = sadd.s32 1, %s546_s13  ;;  %p484_p0 = scmp.ge.s32.totalorder %s550_s14, 1  ;;  %s550_s14 = sphi %s578_s14, %s13_s14   ;;  %s546_s13 = sphi %s576_s13, %s659_s13   ;;  %s542_s12 = sphi %s574_s12, %s658_s12  }
   0x3   : > { %p34_p1 = scmp.ge.s32.totalorder %s32_s15, 2  ;;  %p189_p2 = scmp.lt.s32.totalorder %s550_s14, 3 }
   0x5   : > { %s661_s15 = smov (%p34_p1, %s32_s15), 0  ;;  %p190_p3 = pnand %p484_p0, %p189_p2 }
   0x6   : > { %p230_p4 = scmp.lt.s32.totalorder (!%p190_p3), %s542_s12, 1 }
   0x7   : > { %193 = sbr.rel (%p190_p3) target bundleno = 268 (0x10c), region = 32 }
   0xc   : > { %v352_v0 = vld [vmem:[%s652_s2] sm:$0xf]  ;;  %v552_v1 = vmov 0   ;;  %s663_s12 = smov (!%p230_p4, %s542_s12), 1  ;;  %vm271_vm0 = vcmask 1043456   ;;  %v318_v28 = vlaneseq  ;;  %vm261_vm3 = vcmask 0  }
   0xd   : > { %517 = vset.pattern.permute.xlu0 %v552_v1  ;;  %s490_s18 = sshll.u32 %s663_s12, 3  ;;  %s487_s22 = sshll.u32 %s663_s12, 1 }
   0xe   : > { %355 = vperm.xlu0 %517, %v352_v0   ;;  %s237_s21 = scalar_lea.vmem %s650_s0, %s490_s18  ;;  %s248_s25 = scalar_lea.vmem %s651_s1, %s487_s22  ;;  %v319_v31 = vshrl.u32 %v318_v28, 7 }
   0xf   : > { %v263_v2 = vld [vmem:[%s237_s21] sm:$0xff]  ;;  %s628_s28 = scalar_lea.vmem %s653_s3, %s663_s12 }
  0x10   : > { %266 = vst [vmem:[#allocation1] ss:$2 sm:$0xff] %v263_v2  ;;  %v264_v29 = vld [vmem:[%s248_s25] sm:$0x3] }
  0x11   : > { %v320_v32 = vperm.slane %v264_v29, 0  ;;  %v321_v33 = vperm.slane %v264_v29, 1 }
  0x13   : > { %vm610_vm1 = vcmp.eq.s32.totalorder %v319_v31, %v320_v32  ;;  %vm614_vm2 = vcmp.eq.s32.totalorder %v319_v31, %v321_v33 }
  0x17   : > { %v268_v3 = vld.sshfl [vmem:[#allocation1 + $0x8] sm:$0xff pattern:$0x75316420]  ;;  %v267_v5 = vld.sshfl [vmem:[#allocation1] sm:$0xff pattern:$0x75316420] }
  0x18   : > { %v279_v4 = vsel %vm271_vm0, %v268_v3, -inf  ;;  %v272_v7 = vsel %vm271_vm0, %v267_v5, -inf }
  0x19   : > { %v280_v6 = vrot.slane %v279_v4, 4  ;;  %v273_v8 = vrot.slane %v272_v7, 4 }
  0x1b   : > { %v281_v9 = vmax.f32 %v279_v4, %v280_v6  ;;  %v274_v10 = vmax.f32 %v272_v7, %v273_v8  ;;  %v553_v7 = vmov 0.0  }
  0x1c   : > { %262 = vst.msk [vmem:[%s628_s28] sm:$0x1] %vm261_vm3, %v553_v7 }
  0x1d   : > { %v282_v11 = vrot.slane %v281_v9, 2  ;;  %v275_v12 = vrot.slane %v274_v10, 2 }
  0x1f   : > { %v283_v13 = vmax.f32 %v281_v9, %v282_v11  ;;  %v276_v14 = vmax.f32 %v274_v10, %v275_v12 }
  0x21   : > { %v284_v15 = vrot.slane %v283_v13, 1  ;;  %v277_v16 = vrot.slane %v276_v14, 1 }
  0x23   : > { %v285_v17 = vmax.f32 %v283_v13, %v284_v15  ;;  %v278_v18 = vmax.f32 %v276_v14, %v277_v16 }
  0x25   : > { %v288_v19 = vrot.slane %v285_v17, 4 }
  0x27   : > { %v289_v20 = vsel %vm271_vm0, %v278_v18, %v288_v19 }
  0x28   : > { %v291_v21 = vsub.f32 %v263_v2, %v289_v20 }
  0x2a   : > { %v292_v22 = vmul.f32 1.442695, %v291_v21 }
  0x2c   : > { %518 = vpow2.f32 %v292_v22 }
  0x32   : > { %v519_v23 = vpop.eup %518 }
  0x33   : > { %295 = vst [vmem:[#allocation1] ss:$2 sm:$0xff] %v519_v23 }
  0x3a   : > { %v296_v24 = vld.sshfl [vmem:[#allocation1] sm:$0xff pattern:$0x75316420]  ;;  %v297_v25 = vld.sshfl [vmem:[#allocation1 + $0x8] sm:$0xff pattern:$0x75316420] }
  0x3b   : > { %325 = vst [vmem:[#allocation1] ss:$2 sm:$0xff] %v291_v21  ;;  %v300_v26 = vsel %vm271_vm0, %v296_v24, 0.0  ;;  %v307_v27 = vsel %vm271_vm0, %v297_v25, 0.0 }
  0x3c   : > { %v301_v30 = vrot.slane %v300_v26, 4  ;;  %v308_v34 = vrot.slane %v307_v27, 4 }
  0x3e   : > { %v302_v37 = vadd.f32 %v301_v30, %v300_v26  ;;  %v309_v40 = vadd.f32 %v308_v34, %v307_v27 }
  0x40   : > { %v303_v43 = vrot.slane %v302_v37, 2  ;;  %v310_v44 = vrot.slane %v309_v40, 2 }
  0x42   : > { %v326_v36 = vld.sshfl [vmem:[#allocation1] sm:$0xff pattern:$0x75316420]  ;;  %v327_v39 = vld.sshfl [vmem:[#allocation1 + $0x8] sm:$0xff pattern:$0x75316420]  ;;  %v304_v47 = vadd.f32 %v303_v43, %v302_v37  ;;  %v311_v49 = vadd.f32 %v310_v44, %v309_v40 }
  0x43   : > { %v330_v41 = vsel %vm610_vm1, %v326_v36, 0.0  ;;  %v331_v42 = vsel %vm614_vm2, %v327_v39, 0.0  ;;  %v384_v40 = vld [vmem:[%s628_s28] sm:$0x1] }
  0x44   : > { %v332_v45 = vsel %vm271_vm0, %v330_v41, 0.0  ;;  %v339_v46 = vsel %vm271_vm0, %v331_v42, 0.0  ;;  %v305_v51 = vrot.slane %v304_v47, 1  ;;  %v312_v53 = vrot.slane %v311_v49, 1 }
  0x45   : > { %v333_v48 = vrot.slane %v332_v45, 4  ;;  %v340_v50 = vrot.slane %v339_v46, 4 }
  0x46   : > { %v306_v55 = vadd.f32 %v305_v51, %v304_v47  ;;  %v313_v57 = vadd.f32 %v312_v53, %v311_v49 }
  0x47   : > { %v334_v52 = vadd.f32 %v333_v48, %v332_v45  ;;  %v341_v54 = vadd.f32 %v340_v50, %v339_v46 }
  0x48   : > { %520 = vlog2.f32 %v306_v55 }
  0x49   : > { %v335_v56 = vrot.slane %v334_v52, 2  ;;  %v342_v58 = vrot.slane %v341_v54, 2  ;;  %522 = vlog2.f32 %v313_v57 }
  0x4b   : > { %v336_v59 = vadd.f32 %v335_v56, %v334_v52  ;;  %v343_v60 = vadd.f32 %v342_v58, %v341_v54 }
  0x4d   : > { %v337_v61 = vrot.slane %v336_v59, 1  ;;  %v344_v63 = vrot.slane %v343_v60, 1 }
  0x4e   : > { %v521_v62 = vpop.eup %520 }
  0x4f   : > { %v523_v0 = vpop.eup %522  ;;  %v315_v1 = vmul.f32 0.6931472, %v521_v62  ;;  %v338_v2 = vadd.f32 %v337_v61, %v336_v59  ;;  %v345_v4 = vadd.f32 %v344_v63, %v343_v60 }
  0x50   : > { %v317_v3 = vmul.f32 0.6931472, %v523_v0 }
  0x51   : > { %v346_v5 = vsub.f32 %v338_v2, %v315_v1 }
  0x52   : > { %v347_v6 = vsub.f32 %v345_v4, %v317_v3 }
  0x53   : > { %v348_v8 = vmul.f32 1.442695, %v346_v5 }
  0x54   : > { %v350_v9 = vmul.f32 1.442695, %v347_v6 }
  0x55   : > { %524 = vpow2.f32 %v348_v8 }
  0x56   : > { %526 = vpow2.f32 %v350_v9 }
  0x5b   : > { %v525_v11 = vpop.eup %524 }
  0x5c   : > { %v527_v14 = vpop.eup %526  ;;  %v376_v21 = vsub.f32 1.0, %v525_v11 }
  0x5d   : > { %v377_v22 = vsub.f32 1.0, %v527_v14 }
  0x5e   : > { %v378_v27 = vmul.f32 %v376_v21, %v376_v21 }
  0x5f   : > { %v379_v28 = vmul.f32 %v377_v22, %v377_v22 }
  0x60   : > { %v380_v33 = vsub.f32 0.0, %v378_v27 }
  0x61   : > { %v381_v34 = vsub.f32 0.0, %v379_v28 }
  0x80   : > { %v356_v10 = vpop.permute.xlu0 %355 }
  0x81   : > { %v358_v12 = vsel %vm610_vm1, %v356_v10, 0.0  ;;  %v359_v13 = vsel %vm614_vm2, %v356_v10, 0.0 }
  0x82   : > { %v360_v15 = vsel %vm271_vm0, %v358_v12, 0.0  ;;  %v367_v16 = vsel %vm271_vm0, %v359_v13, 0.0 }
  0x83   : > { %v361_v17 = vrot.slane %v360_v15, 4  ;;  %v368_v18 = vrot.slane %v367_v16, 4 }
  0x85   : > { %v362_v19 = vadd.f32 %v361_v17, %v360_v15  ;;  %v369_v20 = vadd.f32 %v368_v18, %v367_v16 }
  0x87   : > { %v363_v23 = vrot.slane %v362_v19, 2  ;;  %v370_v24 = vrot.slane %v369_v20, 2 }
  0x89   : > { %v364_v25 = vadd.f32 %v363_v23, %v362_v19  ;;  %v371_v26 = vadd.f32 %v370_v24, %v369_v20 }
  0x8b   : > { %v365_v29 = vrot.slane %v364_v25, 1  ;;  %v372_v30 = vrot.slane %v371_v26, 1 }
  0x8d   : > { %v366_v31 = vadd.f32 %v365_v29, %v364_v25  ;;  %v373_v32 = vadd.f32 %v372_v30, %v371_v26 }
  0x8f   : > { %v374_v35 = vmul.f32 %v366_v31, %v346_v5  ;;  %v375_v36 = vmul.f32 %v373_v32, %v347_v6 }
  0x91   : > { %v382_v37 = vmul.f32 %v380_v33, %v374_v35  ;;  %v383_v38 = vmul.f32 %v381_v34, %v375_v36 }
  0x93   : > { %v385_v39 = vadd.f32 %v383_v38, %v382_v37 }
  0x95   : > { %386 = vadd.xlane.f32.xlu0 %v385_v39 }
 0x108   : > { %v387_v41 = vpop.xlane.xlu0 %386 }
 0x109   : > { %v388_v42 = vadd.f32 %v387_v41, %v384_v40 }
 0x10b   : > { %390 = vst.msk [vmem:[%s628_s28] sm:$0x1] %vm261_vm3, %v388_v42 }
 0x10c PF: > { %s13_s14 = sadd.s32 1, %s550_s14   ;;  %s658_s12 = smov %s546_s13 }
 0x10d   : > { %p10_p5 = scmp.ge.s32.totalorder %s13_s14, 4   ;;  %s659_s13 = smov %s661_s15 }
 0x10f   :  { %12 = sbr.rel (!%p10_p5) target bundleno = 2 (0x2), region = 69 }

</bundles_post_ra>
